<compile_context>
chip_gen: v7x
topology: tpu7x:2x2x1
jax: 0.10.0
libtpu: 0.0.40
codegen_flags: <defaults>
</compile_context>

<pallas_src>
import jax
import jax.numpy as jnp
from jax.experimental import pallas as pl
from jax.experimental.pallas import tpu as pltpu

_COLS_CANDIDATES = (512, 256, 128)   # lane-dense tile widths (multiples of 128)
_MAX_BLOCK_ROWS = 1024               # 1024 x 512 x 4B = 2 MiB f32 per input per step
_SUBLANE = 32                        # block_rows multiple; valid for f32/bf16/int8


def _choose_cols(n):
    """Pick cols so the flat length-n array reshapes to (n // cols, cols) for free."""
    for cols in _COLS_CANDIDATES:
        if n % cols == 0:
            return cols, n
    cols = _COLS_CANDIDATES[-1]
    return cols, pl.cdiv(n, cols) * cols


def _to_2d(x, cols, padded_n):
    flat = x.reshape(-1)                       # free for contiguous arrays
    if padded_n != flat.shape[0]:
        # TODO(synk): rare ragged fallback (n % 128 != 0) copies the array once.
        flat = jnp.pad(flat, (0, padded_n - flat.shape[0]))
    return flat.reshape(padded_n // cols, cols)


def _grid_params(rows, max_block_rows):
    block_rows = max(_SUBLANE, (max_block_rows // _SUBLANE) * _SUBLANE)
    if rows <= block_rows:
        block_rows = rows                      # single full-extent block (any dtype ok)
    blocks_total = pl.cdiv(rows, block_rows)
    num_par = 2 if blocks_total >= 2 else 1    # megacore split (v7x); harmless on 1-TC chips
    blocks_per_par = pl.cdiv(blocks_total, num_par)
    needs_row_mask = (rows % block_rows != 0) or (num_par * blocks_per_par != blocks_total)
    return block_rows, blocks_total, num_par, blocks_per_par, needs_row_mask


def _make_kernel(*, rows, block_rows, blocks_per_par, needs_row_mask, masked):
    def kernel(*refs):
        if masked:
            x_ref, y_ref, m_ref, out_ref = refs
        else:
            x_ref, y_ref, out_ref = refs
        p = pl.program_id(0)
        i = pl.program_id(1)

        @pl.when(i == 0)
        def _():
            out_ref[...] = jnp.zeros_like(out_ref)

        d = jnp.abs(x_ref[...].astype(jnp.float32) - y_ref[...].astype(jnp.float32))
        if masked:
            d = d * m_ref[...].astype(jnp.float32)
        if needs_row_mask:
            b = p * blocks_per_par + i               # un-clamped global block id
            rem = rows - b * block_rows              # valid rows in this block (<= 0: none)
            row_ids = jax.lax.broadcasted_iota(jnp.int32, d.shape, 0)
            d = jnp.where(row_ids < rem, d, 0.0)     # also kills garbage in OOB rows
        # Per-lane partial sums only; the cross-lane reduce happens in the wrapper.
        out_ref[...] += jnp.sum(d, axis=0, keepdims=True)[None]

    return kernel


def _l1_partial_sums(operands, *, max_block_rows, masked):
    rows, cols = operands[0].shape
    block_rows, blocks_total, num_par, blocks_per_par, needs_row_mask = _grid_params(
        rows, max_block_rows)

    def in_index_map(p, i):
        b = p * blocks_per_par + i
        return (jnp.minimum(b, blocks_total - 1), 0)   # clamp keeps every DMA in bounds

    kernel = _make_kernel(rows=rows, block_rows=block_rows,
                          blocks_per_par=blocks_per_par,
                          needs_row_mask=needs_row_mask, masked=masked)

    return pl.pallas_call(
        kernel,
        out_shape=jax.ShapeDtypeStruct((num_par, 1, cols), jnp.float32),
        grid=(num_par, blocks_per_par),
        in_specs=[pl.BlockSpec((block_rows, cols), in_index_map) for _ in operands],
        out_specs=pl.BlockSpec((1, 1, cols), lambda p, i: (p, 0, 0)),
        compiler_params=pltpu.CompilerParams(
            dimension_semantics=("parallel", "arbitrary"),
            vmem_limit_bytes=32 * 1024 * 1024,
        ),
    )(*operands)


def l1_mean_pallas(a, b, *, max_block_rows=_MAX_BLOCK_ROWS):
    """mean(|a - b|) over all elements, streamed through a Pallas TPU kernel."""
    assert a.shape == b.shape, "L1Loss expects equal shapes"
    n = a.size
    cols, padded_n = _choose_cols(n)
    x2d = _to_2d(a, cols, padded_n)
    y2d = _to_2d(b, cols, padded_n)
    partial = _l1_partial_sums([x2d, y2d], max_block_rows=max_block_rows, masked=False)
    return jnp.sum(partial) / jnp.float32(n)


def l1_masked_mean_pallas(a, b, mask, *, max_block_rows=_MAX_BLOCK_ROWS):
    """mean(|a - b|[mask]) == sum(|a - b| * mask) / count(selected elements)."""
    assert a.shape == b.shape, "L1Loss expects equal shapes"
    # torch boolean indexing: mask matches the leading dims, each True selects a
    # whole trailing sub-tensor. Count comes from the small mask in the wrapper.
    sel_per_true = 1
    for d in a.shape[mask.ndim:]:
        sel_per_true *= d
    count = jnp.sum(mask) * sel_per_true
    # NOTE: an all-False mask yields inf/nan, matching torch l1[mask].mean().

    m8 = mask.astype(jnp.int8)                 # 1 byte/elem stream, never f32
    if m8.ndim < a.ndim:
        m8 = m8.reshape(m8.shape + (1,) * (a.ndim - m8.ndim))
    m8 = jnp.broadcast_to(m8, a.shape)

    n = a.size
    cols, padded_n = _choose_cols(n)
    x2d = _to_2d(a, cols, padded_n)
    y2d = _to_2d(b, cols, padded_n)
    m2d = _to_2d(m8, cols, padded_n)
    partial = _l1_partial_sums([x2d, y2d, m2d], max_block_rows=max_block_rows, masked=True)
    return jnp.sum(partial) / count.astype(jnp.float32)


class L1Loss:
    """JAX/Pallas port of stable_audio_tools L1Loss (LossModule subclass)."""

    def __init__(self, key_a, key_b, weight=1.0, mask_key=None,
                 name='l1_loss', decay=1.0):
        self.name = name
        self.key_a = key_a
        self.key_b = key_b
        self.mask_key = mask_key
        self.decay = float(decay)
        self.master_weight = float(weight)
        self.weight = jnp.asarray(float(weight), dtype=jnp.float32)  # registered buffer

    def decay_weight(self):
        # TODO(synk): Python-side state mutation; freezes under jax.jit of __call__.
        if self.decay != 1.0:
            self.weight = self.weight * self.decay
        elif self.decay == 1.0 and float(self.weight) != self.master_weight:
            self.weight = jnp.asarray(self.master_weight, dtype=jnp.float32)

    def __call__(self, info):
        a = info[self.key_a]
        b = info[self.key_b]
        if self.mask_key is not None and self.mask_key in info:
            loss = l1_masked_mean_pallas(a, b, info[self.mask_key])
        else:
            loss = l1_mean_pallas(a, b)
        self.decay_weight()
        return self.weight * loss


if __name__ == "__main__":
    key = jax.random.PRNGKey(0)
    ka, kb, km, km2 = jax.random.split(key, 4)

    # Small time-domain signals: batch=2, channels=4, time=256.
    a = jax.random.normal(ka, (2, 4, 256), dtype=jnp.float32)
    b = jax.random.normal(kb, (2, 4, 256), dtype=jnp.float32)
    info = {"audio_a": a, "audio_b": b}

    # Unmasked path.
    loss_module = L1Loss(key_a="audio_a", key_b="audio_b", weight=1.0, decay=1.0)
    loss = loss_module(info)
    jax.block_until_ready(loss)
    ref = jnp.mean(jnp.abs(a - b))
    assert loss.shape == () and loss.dtype == jnp.float32
    assert bool(jnp.allclose(loss, ref, rtol=1e-5, atol=1e-6)), (loss, ref)

    # Masked path (full-shape boolean mask).
    mask = jax.random.bernoulli(km, 0.5, (2, 4, 256))
    info["mask"] = mask
    masked_module = L1Loss(key_a="audio_a", key_b="audio_b",
                           mask_key="mask", weight=1.0)
    mloss = masked_module(info)
    jax.block_until_ready(mloss)
    mref = jnp.sum(jnp.abs(a - b) * mask) / jnp.sum(mask)
    assert bool(jnp.allclose(mloss, mref, rtol=1e-5, atol=1e-6)), (mloss, mref)

    # Leading-dims mask (torch: l1[mask] selects whole (C, T) slabs).
    binfo = {"audio_a": a, "audio_b": b, "mask": jnp.array([True, False])}
    bl = L1Loss("audio_a", "audio_b", mask_key="mask")(binfo)
    jax.block_until_ready(bl)
    bref = jnp.mean(jnp.abs(a[0] - b[0]))
    assert bool(jnp.allclose(bl, bref, rtol=1e-5, atol=1e-6)), (bl, bref)

    # Exercise the multi-block / parallel-split / partial-block paths with a
    # small block cap and native bf16 streaming (rows=160, block_rows=64).
    a2 = jax.random.normal(ka, (2, 4, 10240), dtype=jnp.bfloat16)
    b2 = jax.random.normal(kb, (2, 4, 10240), dtype=jnp.bfloat16)
    l2 = l1_mean_pallas(a2, b2, max_block_rows=64)
    jax.block_until_ready(l2)
    ref2 = jnp.mean(jnp.abs(a2.astype(jnp.float32) - b2.astype(jnp.float32)))
    assert bool(jnp.allclose(l2, ref2, rtol=1e-4, atol=1e-5)), (l2, ref2)

    mask2 = jax.random.bernoulli(km2, 0.5, (2, 4, 10240))
    ml2 = l1_masked_mean_pallas(a2, b2, mask2, max_block_rows=64)
    jax.block_until_ready(ml2)
    mref2 = (jnp.sum(jnp.abs(a2.astype(jnp.float32) - b2.astype(jnp.float32)) * mask2)
             / jnp.sum(mask2))
    assert bool(jnp.allclose(ml2, mref2, rtol=1e-4, atol=1e-5)), (ml2, mref2)

    print("KERNEL_OK")
</pallas_src>

<mosaic_0001>
module attributes {stable_mosaic.version = 11 : i64} {
  func.func @kernel(%arg0: i32, %arg1: i32, %arg2: memref<4x512xf32, #tpu.memory_space<vmem>>, %arg3: memref<4x512xf32, #tpu.memory_space<vmem>>, %arg4: memref<1x1x512xf32, #tpu.memory_space<vmem>>) attributes {dimension_semantics = [#tpu.dimension_semantics<parallel>, #tpu.dimension_semantics<arbitrary>], iteration_bounds = array<i64: 1, 1>, scalar_prefetch = 0 : i64, scratch_operands = 0 : i64, tpu.core_type = #tpu.core_type<tc>, window_params = [{transform_indices = @transform_0, window_bounds = array<i64: 4, 512>}, {transform_indices = @transform_1, window_bounds = array<i64: 4, 512>}, {transform_indices = @transform_2, window_bounds = array<i64: 1, 1, 512>}]} {
    %c0_i32 = arith.constant 0 : i32
    %0 = arith.cmpi eq, %arg1, %c0_i32 : i32
    %1 = arith.extui %0 : i1 to i32
    %c0_i32_0 = arith.constant 0 : i32
    %2 = arith.cmpi ne, %1, %c0_i32_0 : i32
    scf.if %2 {
      %cst_10 = arith.constant 0.000000e+00 : f32
      %13 = vector.broadcast %cst_10 : f32 to vector<1x1x512xf32>
      %c0_11 = arith.constant 0 : index
      %c0_12 = arith.constant 0 : index
      %c0_13 = arith.constant 0 : index
      %14 = vector.load %arg4[%c0_11, %c0_12, %c0_13] : memref<1x1x512xf32, #tpu.memory_space<vmem>>, vector<1x1x512xf32>
      tpu.vector_store %arg4[%c0_11, %c0_12, %c0_13], %13 {strides = array<i32>} : memref<1x1x512xf32, #tpu.memory_space<vmem>>, vector<1x1x512xf32>,
    } else {
    }
    %c0 = arith.constant 0 : index
    %c0_1 = arith.constant 0 : index
    %3 = vector.load %arg2[%c0, %c0_1] : memref<4x512xf32, #tpu.memory_space<vmem>>, vector<4x512xf32>
    %c0_2 = arith.constant 0 : index
    %c0_3 = arith.constant 0 : index
    %4 = vector.load %arg3[%c0_2, %c0_3] : memref<4x512xf32, #tpu.memory_space<vmem>>, vector<4x512xf32>
    %5 = arith.subf %3, %4 : vector<4x512xf32>
    %6 = math.absf %5 : vector<4x512xf32>
    %c0_4 = arith.constant 0 : index
    %c0_5 = arith.constant 0 : index
    %c0_6 = arith.constant 0 : index
    %7 = vector.load %arg4[%c0_4, %c0_5, %c0_6] : memref<1x1x512xf32, #tpu.memory_space<vmem>>, vector<1x1x512xf32>
    %cst = arith.constant dense<0.000000e+00> : vector<512xf32>
    %8 = vector.multi_reduction <add>, %6, %cst [0] : vector<4x512xf32> to vector<512xf32>
    %9 = vector.shape_cast %8 : vector<512xf32> to vector<1x512xf32>
    %10 = vector.shape_cast %9 : vector<1x512xf32> to vector<1x1x512xf32>
    %11 = arith.addf %7, %10 : vector<1x1x512xf32>
    %c0_7 = arith.constant 0 : index
    %c0_8 = arith.constant 0 : index
    %c0_9 = arith.constant 0 : index
    %12 = vector.load %arg4[%c0_7, %c0_8, %c0_9] : memref<1x1x512xf32, #tpu.memory_space<vmem>>, vector<1x1x512xf32>
    tpu.vector_store %arg4[%c0_7, %c0_8, %c0_9], %11 {strides = array<i32>} : memref<1x1x512xf32, #tpu.memory_space<vmem>>, vector<1x1x512xf32>,
    return
  }
  func.func @transform_0(%arg0: i32, %arg1: i32) -> (i32, i32) {
    %c1_i32 = arith.constant 1 : i32
    %0 = arith.muli %arg0, %c1_i32 : i32
    %1 = arith.addi %0, %arg1 : i32
    %c0_i32 = arith.constant 0 : i32
    %2 = arith.minsi %1, %c0_i32 : i32
    %c0_i32_0 = arith.constant 0 : i32
    %c0_i32_1 = arith.constant 0 : i32
    return %2, %c0_i32_0 : i32, i32
  }
  func.func @transform_1(%arg0: i32, %arg1: i32) -> (i32, i32) {
    %c1_i32 = arith.constant 1 : i32
    %0 = arith.muli %arg0, %c1_i32 : i32
    %1 = arith.addi %0, %arg1 : i32
    %c0_i32 = arith.constant 0 : i32
    %2 = arith.minsi %1, %c0_i32 : i32
    %c0_i32_0 = arith.constant 0 : i32
    %c0_i32_1 = arith.constant 0 : i32
    return %2, %c0_i32_0 : i32, i32
  }
  func.func @transform_2(%arg0: i32, %arg1: i32) -> (i32, i32, i32) {
    %c0_i32 = arith.constant 0 : i32
    %c0_i32_0 = arith.constant 0 : i32
    %c0_i32_1 = arith.constant 0 : i32
    return %arg0, %c0_i32, %c0_i32_0 : i32, i32, i32
  }
}

</mosaic_0001>

<bundles_post_ra>
// kernel: tpu_custom_call.1
= control target key start
LH: loop header
LB: loop body
LE: loop exit
PB: predicated region body
PF: predicated region fallthrough
CT: control target
= control target key end

     0   :  { %7 = vsyncpa [#allocation3], 0  ;;  %s303_s0 = inlined_call_operand.hbm [shape: f32[4,512], index: 0, kind: input, shape index: {}]   ;;  %s304_s1 = inlined_call_operand.hbm [shape: f32[4,512], index: 1, kind: input, shape index: {}]   ;;  %s305_s2 = inlined_call_operand.hbm [shape: f32[1,1,512], index: 2, kind: output, shape index: {}]  }
   0x1   :  { %8 = vsyncpa [#allocation6], 0 }
   0x2   :  { %9 = vsyncpa [#allocation4], 0  ;;  %s239_s9 = smov [#allocation2]   ;;  %s240_s11 = smov [#allocation5]  }
   0x3   :  { %s22_s10 = sshll.u32 %s239_s9, 4  ;;  %s38_s12 = sshll.u32 %s240_s11, 4  ;;  %s23_s10 = int_to_ptr.vmem [resolvable:$true] %s22_s10  ;;  %s39_s12 = int_to_ptr.vmem [resolvable:$true] %s38_s12 }
   0x4   :  { %s167_s15 = scalar_lea.hbm %s303_s0, 256 }
   0x5   :  { %p168_p0 = scmp.ne.s32.totalorder %s303_s0, %s167_s15  ;;  %p171_p1 = scmp.lt.u32.totalorder %s167_s15, %s303_s0 }
   0x7   :  { %p173_p2 = pnand %p171_p1, %p168_p0 }
   0x9   :  { %176 = shalt.err (!%p173_p2)
}
   0xa   :  { %s177_s20 = scalar_lea.vmem %s23_s10, 256  ;;  %p182_p4 = scmp.lt.s32.totalorder %s23_s10, %s23_s10 }
   0xb   :  { %p178_p3 = scmp.ne.s32.totalorder %s23_s10, %s177_s20  ;;  %p183_p5 = scmp.lt.s32.totalorder %s177_s20, %s177_s20 }
   0xd   :  { %p184_p6 = por %p183_p5, %p182_p4 }
   0xf   :  { %p185_p7 = pnand %p184_p6, %p178_p3 }
  0x11   :  { %188 = shalt.err (!%p185_p7)
}
  0x12   :  { %25 = dma.hbm_to_vmem [thread:$0]  %s303_s0, 256, %s23_s10, [#allocation3]  }
  0x13   :  { %s189_s25 = scalar_lea.hbm %s304_s1, 256 }
  0x14   :  { %p190_p8 = scmp.ne.s32.totalorder %s304_s1, %s189_s25  ;;  %p193_p9 = scmp.lt.u32.totalorder %s189_s25, %s304_s1 }
  0x16   :  { %p195_p10 = pnand %p193_p9, %p190_p8 }
  0x18   :  { %198 = shalt.err (!%p195_p10)
}
  0x19   :  { %s199_s30 = scalar_lea.vmem %s39_s12, 256  ;;  %p204_p12 = scmp.lt.s32.totalorder %s39_s12, %s39_s12 }
  0x1a   :  { %p200_p11 = scmp.ne.s32.totalorder %s39_s12, %s199_s30  ;;  %p205_p13 = scmp.lt.s32.totalorder %s199_s30, %s199_s30 }
  0x1c   :  { %p206_p0 = por %p205_p13, %p204_p12 }
  0x1e   :  { %p207_p1 = pnand %p206_p0, %p200_p11 }
  0x20   :  { %210 = shalt.err (!%p207_p1)
}
  0x21   :  { %41 = dma.hbm_to_vmem [thread:$0]  %s304_s1, 256, %s39_s12, [#allocation6]  }
  0x22   :  { %233 = dma.done.wait [#allocation3], 256  }
  0x23   :  { %234 = vsyncadd [#allocation3], 4294967040 }
  0x24   :  { %235 = dma.done.wait [#allocation6], 256  }
  0x25   :  { %236 = vsyncadd [#allocation6], 4294967040  ;;  %v58_v0 = vlaneseq  ;;  %v241_v2 = vmov 0.0   ;;  %v63_v3 = vld [vmem:[#allocation2] sm:$0xff]  ;;  %v64_v4 = vld [vmem:[#allocation2 + $0x8] sm:$0xff]  ;;  %vm78_vm1 = vcmask 1043456  }
  0x26   :  { %v65_v5 = vld [vmem:[#allocation5] sm:$0xff]  ;;  %v66_v6 = vld [vmem:[#allocation5 + $0x8] sm:$0xff]  ;;  %v242_v25 = vmov 1966171168   ;;  %s243_s1 = smov [#allocation7]  }
  0x27   :  { %vm283_vm0 = vcmp.lt.s32.totalorder %v58_v0, 512  ;;  %v67_v7 = vsub.f32 %v63_v3, %v65_v5  ;;  %v68_v8 = vsub.f32 %v64_v4, %v66_v6  ;;  %v114_v26 = vunpack.c.l.s4 %v242_v25  ;;  %s148_s4 = sshll.u32 %s243_s1, 4  ;;  %s149_s4 = int_to_ptr.vmem [resolvable:$true] %s148_s4 }
  0x28   :  { %62 = vst.msk [vmem:[#allocation7] sm:$0xf] %vm283_vm0, %v241_v2  ;;  %v117_v36 = vshrl.u32 %v58_v0, 7  ;;  %s211_s5 = scalar_lea.vmem %s149_s4, 64  ;;  %p216_p3 = scmp.lt.s32.totalorder %s149_s4, %s149_s4 }
  0x29   :  { %v69_v9 = vand.u32 2147483647, %v67_v7  ;;  %v70_v10 = vand.u32 2147483647, %v68_v8  ;;  %v115_v35 = vunpack.c.0.s8 %v114_v26  ;;  %p212_p2 = scmp.ne.s32.totalorder %s149_s4, %s211_s5  ;;  %p217_p4 = scmp.lt.s32.totalorder %s211_s5, %s211_s5 }
  0x2b   :  { %v74_v11 = vcombine.high %v69_v9, %v69_v9  ;;  %v79_v12 = vsel %vm78_vm1, %v69_v9, 0.0  ;;  %v75_v13 = vcombine.high %v70_v10, %v70_v10  ;;  %v93_v15 = vsel %vm78_vm1, %v70_v10, 0.0  ;;  %p218_p5 = por %p217_p4, %p216_p3 }
  0x2c   :  { %v80_v14 = vrot.slane %v79_v12, 4  ;;  %v94_v17 = vrot.slane %v93_v15, 4  ;;  %v118_v44 = vsub.s32 %v115_v35, %v117_v36 }
  0x2d   :  { %v86_v16 = vsel %vm78_vm1, %v74_v11, 0.0  ;;  %v100_v20 = vsel %vm78_vm1, %v75_v13, 0.0  ;;  %p219_p6 = pnand %p218_p5, %p212_p2 }
  0x2e   :  { %v81_v18 = vadd.f32 %v80_v14, %v79_v12  ;;  %v87_v19 = vrot.slane %v86_v16, 4  ;;  %v95_v21 = vadd.f32 %v94_v17, %v93_v15  ;;  %v101_v22 = vrot.slane %v100_v20, 4 }
  0x2f   :  { %v71_v51 = vld [vmem:[#allocation7] sm:$0xf] }
  0x30   :  { %v82_v23 = vrot.slane %v81_v18, 2  ;;  %v88_v24 = vadd.f32 %v87_v19, %v86_v16  ;;  %v96_v27 = vrot.slane %v95_v21, 2  ;;  %v102_v28 = vadd.f32 %v101_v22, %v100_v20 }
  0x32   :  { %v83_v29 = vadd.f32 %v82_v23, %v81_v18  ;;  %v89_v30 = vrot.slane %v88_v24, 2  ;;  %v97_v31 = vadd.f32 %v96_v27, %v95_v21  ;;  %v103_v32 = vrot.slane %v102_v28, 2 }
  0x34   :  { %v84_v33 = vrot.slane %v83_v29, 1  ;;  %v90_v34 = vadd.f32 %v89_v30, %v88_v24  ;;  %v98_v37 = vrot.slane %v97_v31, 1  ;;  %v104_v38 = vadd.f32 %v103_v32, %v102_v28 }
  0x36   :  { %v85_v39 = vadd.f32 %v84_v33, %v83_v29  ;;  %v91_v40 = vrot.slane %v90_v34, 1  ;;  %v99_v41 = vadd.f32 %v98_v37, %v97_v31  ;;  %v105_v42 = vrot.slane %v104_v38, 1 }
  0x38   :  { %v92_v43 = vadd.f32 %v91_v40, %v90_v34  ;;  %v106_v45 = vadd.f32 %v105_v42, %v104_v38 }
  0x3a   :  { %v111_v46 = vcombine.low %v85_v39, %v92_v43  ;;  %v112_v47 = vcombine.low %v99_v41, %v106_v45 }
  0x3c   :  { %v119_v48 = vrot.slane %v111_v46, %v118_v44  ;;  %v126_v49 = vrot.slane %v112_v47, %v118_v44 }
  0x3e   :  { %v127_v50 = vcombine.low %v119_v48, %v126_v49 }
  0x40   :  { %v134_v52 = vrot.slane %v127_v50, %v118_v44 }
  0x42   :  { %v136_v53 = vadd.f32 %v134_v52, %v71_v51 }
  0x44   :  { %141 = vst.msk [vmem:[#allocation7] sm:$0xf] %vm283_vm0, %v136_v53 }
  0x45   :  { %222 = shalt.err (!%p219_p6)
}
  0x46   :  { %s223_s8 = scalar_lea.hbm %s305_s2, 64 }
  0x47   :  { %p224_p7 = scmp.ne.s32.totalorder %s305_s2, %s223_s8  ;;  %p227_p8 = scmp.lt.u32.totalorder %s223_s8, %s305_s2 }
  0x49   :  { %p229_p9 = pnand %p227_p8, %p224_p7 }
  0x4b   :  { %232 = shalt.err (!%p229_p9)
}
  0x4c   :  { %151 = dma.vmem_to_hbm [thread:$0]  %s149_s4, 64, %s305_s2, [#allocation4]  }
  0x4d   :  { %237 = dma.done.wait [#allocation4], 64  }
  0x4e   :  { %238 = vsyncadd [#allocation4], 4294967232 }
  0x4f   :  { %155 = vsyncpa [#allocation3], 1 }
  0x50   :  { %156 = vsyncpa [#allocation6], 1 }
  0x51   :  { %157 = vsyncpa [#allocation4], 1 }

</bundles_post_ra>
